<compile_context>
chip_gen: v7x
topology: tpu7x:2x2x1
jax: 0.10.0
libtpu: 0.0.40
codegen_flags: <defaults>
</compile_context>

<pallas_src>
import math

import jax
import jax.numpy as jnp
from jax import lax
from jax.experimental import pallas as pl
from jax.experimental.pallas import tpu as pltpu


# ----------------------------------------------------------------------------- setup
def make_positional_encoding_table(d_model: int, max_len: int = 100) -> jnp.ndarray:
    """Builds pe of shape (max_len, 1, d_model), identical to the PyTorch buffer."""
    position = jnp.arange(0, max_len, dtype=jnp.float32)[:, None]              # (max_len, 1)
    div_term = jnp.exp(
        jnp.arange(0, d_model, 2, dtype=jnp.float32) * (-math.log(10000.0) / d_model)
    )
    angles = position * div_term                                               # (max_len, d/2)
    pe = jnp.zeros((max_len, d_model), dtype=jnp.float32)
    pe = pe.at[:, 0::2].set(jnp.sin(angles))
    pe = pe.at[:, 1::2].set(jnp.cos(angles))
    return pe[:, None, :]                                                      # (max_len, 1, d)


# ----------------------------------------------------------------------------- kernel
def _mix32(h):
    """lowbias32 integer hash -- pure uint32 VPU ops (portable: TPU + interpret)."""
    h = h ^ (h >> 16)
    h = h * jnp.uint32(0x7FEB352D)
    h = h ^ (h >> 15)
    h = h * jnp.uint32(0x846CA68B)
    h = h ^ (h >> 16)
    return h


def _make_kernel(dropout_p: float, training: bool, lane_repeat: int):
    """PE add (+ fused inverted dropout in training mode).  dropout_p is static.

    lane_repeat > 1 is used by the batch-folded path: the (ts, D) PE tile is
    replicated across lanes in-register (only taken when D % 128 == 0, so every
    concat offset is 128-aligned -> plain vreg placement, no cross-lane shuffles).
    """
    apply_dropout = bool(training) and dropout_p > 0.0
    drop_all = apply_dropout and dropout_p >= 1.0
    # Direct u32 threshold: keep iff hash >= p * 2^32  (P[keep] = 1 - p).
    threshold = min(int(round(dropout_p * 2.0 ** 32)), 2 ** 32 - 1)
    keep_scale = 1.0 / (1.0 - dropout_p) if dropout_p < 1.0 else 0.0

    def kernel(scalars_ref, x_ref, pe_ref, o_ref):
        # scalars_ref (SMEM, scalar-prefetch): [timestep_or_0, dropout_seed]
        pe = pe_ref[...].astype(jnp.float32)
        if lane_repeat > 1:
            pe = jnp.concatenate([pe] * lane_repeat, axis=-1)       # 128-aligned lane concat

        # Accumulate in f32 regardless of activation dtype; downcast on store.
        y = x_ref[...].astype(jnp.float32) + pe

        if drop_all:
            y = jnp.zeros_like(y)
        elif apply_dropout:
            # Fused inverted dropout riding the VPU slack under the DMA.
            shape = y.shape
            idx = lax.broadcasted_iota(jnp.int32, shape, 0) + pl.program_id(0) * shape[0]
            for ax in range(1, len(shape)):                          # global flat element index
                idx = idx * shape[ax] + lax.broadcasted_iota(jnp.int32, shape, ax)
            seed_u = scalars_ref[1].astype(jnp.uint32) * jnp.uint32(0x9E3779B9)
            h = _mix32(idx.astype(jnp.uint32) + seed_u)
            keep = h >= jnp.uint32(threshold)
            y = jnp.where(keep, y * jnp.float32(keep_scale), jnp.float32(0.0))

        o_ref[...] = y.astype(o_ref.dtype)

    return kernel


# ----------------------------------------------------------------------------- tiling
def _round_up(x: int, m: int) -> int:
    return ((x + m - 1) // m) * m


def _choose_block_s(S: int, row_bytes: int, target_tile_bytes: int, min_tiles: int = 4) -> int:
    """Rows per sequence tile.

    * ~target_tile_bytes per streamed x tile (4 MiB default; bump to ~8 MiB on v7x
      where a 12 MiB-traffic step is only ~4 us at 3.2 TB/s).
    * never collapse to a single grid step once the tensor is above a couple of MiB:
      >= min_tiles keeps the double buffer saturated (prefetch/writeback overlap) and
      lets v7x's two TensorCores split the "parallel" grid axis.
    * multiple of 8 (f32 sublane) unless it is the full extent S.
    """
    total_bytes = S * row_bytes
    rows = max(8, target_tile_bytes // max(row_bytes, 1))
    if total_bytes >= (2 << 20):
        rows = min(rows, max(8, _round_up(pl.cdiv(S, min_tiles), 8)))
    if rows >= S:
        return S
    return int(max(8, (rows // 8) * 8))


def _compiler_params(x_tile_bytes: int, pe_tile_bytes: int) -> pltpu.CompilerParams:
    # Explicit scoped-VMEM budget: double-buffered (x tile + out tile + pe tile) plus
    # headroom for Mosaic-internal scratch.  Default tiling keeps this ~<32 MiB, which
    # fits every generation (v5e's 16 MiB scoped *default* is therefore irrelevant and
    # v7x's 64 MiB physical VMEM has ample margin).
    need = 2 * (2 * int(x_tile_bytes) + int(pe_tile_bytes)) + (4 << 20)
    return pltpu.CompilerParams(
        dimension_semantics=("parallel",),
        vmem_limit_bytes=int(max(need, 32 << 20)),
    )


# ----------------------------------------------------------------------------- wrappers
def _forward_3d(x, pe, timestep, dropout_p, training, seed, block_s, target_tile_bytes):
    """Natural (ts, B, D) blocks.  PE streams un-replicated as (ts, 1, D) (or a single
    (1, 1, D) row selected via a scalar-prefetch index_map) and broadcasts over B
    in-register -> ~2N HBM traffic."""
    S, B, D = x.shape
    ts = (_choose_block_s(S, B * D * x.dtype.itemsize, target_tile_bytes)
          if block_s is None else min(int(block_s), S))
    grid = (pl.cdiv(S, ts),)
    scalars = jnp.array([0 if timestep is None else timestep, seed], dtype=jnp.int32)

    if timestep is None:
        pe_arr = pe[:S]                                                     # (S, 1, D) -- tiny
        pe_spec = pl.BlockSpec((ts, 1, D), lambda i, sc: (i, 0, 0))
        pe_tile_bytes = ts * D * pe_arr.dtype.itemsize
    else:
        # Scalar-prefetch timestep drives the pe index_map: one (1,1,D) row, constant
        # block index across the grid -> fetched once, no broadcast_to materialization.
        pe_arr = pe                                                         # (max_len, 1, D)
        pe_spec = pl.BlockSpec((1, 1, D), lambda i, sc: (sc[0], 0, 0))
        pe_tile_bytes = D * pe_arr.dtype.itemsize

    x_tile_bytes = ts * B * D * x.dtype.itemsize
    # v7x tuning knob: sweep pipeline_mode=pl.Buffered(3) on the x/out specs together
    # with target_tile_bytes ~8 MiB if DMA is still exposed.
    return pl.pallas_call(
        _make_kernel(dropout_p, training, lane_repeat=1),
        out_shape=jax.ShapeDtypeStruct((S, B, D), x.dtype),
        grid_spec=pltpu.PrefetchScalarGridSpec(
            num_scalar_prefetch=1,
            grid=grid,
            in_specs=[
                pl.BlockSpec((ts, B, D), lambda i, sc: (i, 0, 0)),
                pe_spec,
            ],
            out_specs=pl.BlockSpec((ts, B, D), lambda i, sc: (i, 0, 0)),
        ),
        compiler_params=_compiler_params(x_tile_bytes, pe_tile_bytes),
    )(scalars, x, pe_arr)


def _forward_folded(x, pe, timestep, dropout_p, training, seed, block_s, target_tile_bytes):
    """D % 128 == 0 and B < 8: fold batch into lanes ((S, B, D) -> (S, B*D), a free
    row-major reshape) so the sublane axis is ts (dense) and the lane axis is a
    multiple of 128 (unmasked vst).  PE still streams un-replicated as (ts, D) and is
    replicated across lanes in-register (128-aligned concat) -> ~2N HBM traffic."""
    S, B, D = x.shape
    BD = B * D
    x2 = x.reshape(S, BD)
    pe2 = pe[:, 0, :]                                                       # (max_len, D)

    ts = (_choose_block_s(S, BD * x.dtype.itemsize, target_tile_bytes)
          if block_s is None else min(int(block_s), S))
    if ts < S:
        ts = max(8, (ts // 8) * 8)                                          # sublane rule for 2-D blocks
        if ts >= S:
            ts = S
    grid = (pl.cdiv(S, ts),)
    scalars = jnp.array([0, seed], dtype=jnp.int32)

    if timestep is None:
        pe_arr = pe2[:S]                                                    # (S, D) -- tiny
        pe_spec = pl.BlockSpec((ts, D), lambda i, sc: (i, 0))
        pe_tile_bytes = ts * D * pe_arr.dtype.itemsize
    else:
        # Single PE row sliced in the wrapper (a (1, D) copy -- negligible); full-array
        # block keeps the (8,128) rule trivially satisfied.
        pe_arr = lax.dynamic_slice_in_dim(pe2, timestep, 1, axis=0)         # (1, D)
        pe_spec = pl.BlockSpec((1, D), lambda i, sc: (0, 0))
        pe_tile_bytes = D * pe_arr.dtype.itemsize

    x_tile_bytes = ts * BD * x.dtype.itemsize
    out2 = pl.pallas_call(
        _make_kernel(dropout_p, training, lane_repeat=B),
        out_shape=jax.ShapeDtypeStruct((S, BD), x.dtype),
        grid_spec=pltpu.PrefetchScalarGridSpec(
            num_scalar_prefetch=1,
            grid=grid,
            in_specs=[
                pl.BlockSpec((ts, BD), lambda i, sc: (i, 0)),
                pe_spec,
            ],
            out_specs=pl.BlockSpec((ts, BD), lambda i, sc: (i, 0)),
        ),
        compiler_params=_compiler_params(x_tile_bytes, pe_tile_bytes),
    )(scalars, x2, pe_arr)
    return out2.reshape(S, B, D)


_PALLAS_MIN_BYTES = 1 << 20  # below ~1 MiB, XLA's fused add beats the custom-call overhead


def positional_encoding_forward(x, pe, timestep=None, *, dropout_p: float = 0.1,
                                training: bool = False, dropout_seed: int = 0,
                                block_s=None, target_tile_bytes: int = 4 << 20,
                                allow_xla_fallback: bool = True):
    """Forward of PositionalEncoding.

    x : (S, B, D); pe : (max_len, 1, D) float32 buffer.
    Eval mode (training=False) is the identity dropout, matching nn.Dropout.eval().
    Training mode applies fused inverted dropout with probability dropout_p; pass a
    fresh `dropout_seed` per call/layer/step (masks are a pure function of the seed).
    """
    S, B, D = x.shape
    max_len = pe.shape[0]
    if timestep is None and S > max_len:
        raise ValueError(f"sequence length {S} exceeds PE table max_len {max_len}")

    # Streamed PE in the activation dtype when it is narrower than f32 (PE values are
    # in [-1, 1]; the add itself stays f32 inside the kernel).
    if x.dtype == jnp.bfloat16:
        pe = pe.astype(jnp.bfloat16)

    # Tiny-input shape gate: kernel launch + per-step overhead dwarfs the work.
    if (allow_xla_fallback and not training
            and S * B * D * x.dtype.itemsize < _PALLAS_MIN_BYTES):
        pe_add = pe[:S] if timestep is None else pe[timestep]
        return (x.astype(jnp.float32) + pe_add.astype(jnp.float32)).astype(x.dtype)

    # Lane/sublane-density dispatch (PE is un-replicated in HBM on every path):
    #   D % 128 == 0, B >= 8 -> natural 3-D blocks (lane- and sublane-dense).
    #   D % 128 == 0, B <  8 -> batch-folded 2-D blocks (lane axis B*D % 128 == 0,
    #                           sublane axis = ts); avoids B-of-8 wasted sublanes.
    #   otherwise            -> natural 3-D blocks (partially masked lanes; see TODO).
    if D % 128 == 0 and B < 8:
        return _forward_folded(x, pe, timestep, dropout_p, training, dropout_seed,
                               block_s, target_tile_bytes)
    return _forward_3d(x, pe, timestep, dropout_p, training, dropout_seed,
                       block_s, target_tile_bytes)


# ----------------------------------------------------------------------------- reference
def _reference(x, pe, timestep=None):
    S = x.shape[0]
    if timestep is None:
        return x + pe[:S]           # pe[:S] is (S, 1, D) -> broadcast over batch
    return x + pe[timestep]         # pe[timestep] is (1, D) -> broadcast over S and B


# ----------------------------------------------------------------------------- demo
if __name__ == "__main__":
    MAX_LEN = 100
    key = jax.random.PRNGKey(0)

    # Small shapes implied by the module: seq=8, batch=2, d_model=32.
    S, B, D = 8, 2, 32
    pe = make_positional_encoding_table(D, MAX_LEN)
    x = jax.random.normal(key, (S, B, D), dtype=jnp.float32)

    # 1) eval, no timestep (natural 3-D path, D < 128) -- forced Pallas path.
    out = jax.block_until_ready(
        positional_encoding_forward(x, pe, dropout_p=0.1, training=False,
                                    allow_xla_fallback=False))
    ref = _reference(x, pe)
    assert out.shape == (S, B, D)
    assert jnp.allclose(out, ref, atol=1e-6), "eval / no-timestep mismatch"

    # 2) eval, timestep path (single PE row via scalar-prefetch index_map).
    out_ts = jax.block_until_ready(
        positional_encoding_forward(x, pe, timestep=5, allow_xla_fallback=False))
    assert jnp.allclose(out_ts, _reference(x, pe, 5), atol=1e-6), "timestep mismatch"

    # 3) training-mode fused dropout: every element is 0 or (x+pe)/(1-p).
    p = 0.5
    out_tr = jax.block_until_ready(
        positional_encoding_forward(x, pe, dropout_p=p, training=True,
                                    dropout_seed=123, allow_xla_fallback=False))
    scaled = ref / (1.0 - p)
    ok = (out_tr == 0.0) | jnp.isclose(out_tr, scaled, rtol=1e-5, atol=1e-6)
    assert bool(jnp.all(ok)), "dropout output not in {0, (x+pe)/(1-p)}"
    drop_frac = float(jnp.mean((out_tr == 0.0).astype(jnp.float32)))
    assert 0.2 < drop_frac < 0.8, f"implausible dropout fraction {drop_frac} for p={p}"

    # 4) multi-step pipelined grid over S (block_s=16 -> grid of 3 tiles).
    S2 = 48
    x2 = jax.random.normal(jax.random.PRNGKey(1), (S2, B, D), dtype=jnp.float32)
    out2 = jax.block_until_ready(
        positional_encoding_forward(x2, pe, block_s=16, allow_xla_fallback=False))
    assert jnp.allclose(out2, _reference(x2, pe), atol=1e-6), "tiled-grid mismatch"

    # 5) batch-folded lane-dense path (d_model=128, B=2 < 8): x folded to (S, B*D),
    #    PE streamed un-replicated and lane-concatenated in-register.
    D3 = 128
    pe3 = make_positional_encoding_table(D3, MAX_LEN)
    x3 = jax.random.normal(jax.random.PRNGKey(2), (16, B, D3), dtype=jnp.float32)
    o3 = jax.block_until_ready(
        positional_encoding_forward(x3, pe3, allow_xla_fallback=False))
    assert jnp.allclose(o3, _reference(x3, pe3), atol=1e-6), "folded lane-dense mismatch"
    o3t = jax.block_until_ready(
        positional_encoding_forward(x3, pe3, timestep=7, allow_xla_fallback=False))
    assert jnp.allclose(o3t, _reference(x3, pe3, 7), atol=1e-6), "folded timestep mismatch"

    print("KERNEL_OK")
</pallas_src>

<mosaic_0001>
module attributes {stable_mosaic.version = 11 : i64} {
  func.func @kernel(%arg0: i32, %arg1: memref<2xi32, #tpu.memory_space<smem>>, %arg2: memref<8x2x32xf32, #tpu.memory_space<vmem>>, %arg3: memref<8x1x32xf32, #tpu.memory_space<vmem>>, %arg4: memref<8x2x32xf32, #tpu.memory_space<vmem>>) attributes {dimension_semantics = [#tpu.dimension_semantics<parallel>], iteration_bounds = array<i64: 1>, scalar_prefetch = 1 : i64, scratch_operands = 0 : i64, tpu.core_type = #tpu.core_type<tc>, window_params = [{transform_indices = @transform_0, window_bounds = array<i64: 8, 2, 32>}, {transform_indices = @transform_1, window_bounds = array<i64: 8, 1, 32>}, {transform_indices = @transform_2, window_bounds = array<i64: 8, 2, 32>}]} {
    %c0 = arith.constant 0 : index
    %c0_0 = arith.constant 0 : index
    %c0_1 = arith.constant 0 : index
    %0 = vector.load %arg3[%c0, %c0_0, %c0_1] : memref<8x1x32xf32, #tpu.memory_space<vmem>>, vector<8x1x32xf32>
    %c0_2 = arith.constant 0 : index
    %c0_3 = arith.constant 0 : index
    %c0_4 = arith.constant 0 : index
    %1 = vector.load %arg2[%c0_2, %c0_3, %c0_4] : memref<8x2x32xf32, #tpu.memory_space<vmem>>, vector<8x2x32xf32>
    %2 = vector.broadcast %0 : vector<8x1x32xf32> to vector<8x2x32xf32>
    %3 = arith.addf %1, %2 : vector<8x2x32xf32>
    %c0_5 = arith.constant 0 : index
    %c0_6 = arith.constant 0 : index
    %c0_7 = arith.constant 0 : index
    %4 = vector.load %arg4[%c0_5, %c0_6, %c0_7] : memref<8x2x32xf32, #tpu.memory_space<vmem>>, vector<8x2x32xf32>
    tpu.vector_store %arg4[%c0_5, %c0_6, %c0_7], %3 {strides = array<i32>} : memref<8x2x32xf32, #tpu.memory_space<vmem>>, vector<8x2x32xf32>,
    return
  }
  func.func @transform_0(%arg0: i32, %arg1: memref<2xi32, #tpu.memory_space<smem>>) -> (i32, i32, i32) {
    %c0_i32 = arith.constant 0 : i32
    %c0_i32_0 = arith.constant 0 : i32
    %c0_i32_1 = arith.constant 0 : i32
    return %arg0, %c0_i32, %c0_i32_0 : i32, i32, i32
  }
  func.func @transform_1(%arg0: i32, %arg1: memref<2xi32, #tpu.memory_space<smem>>) -> (i32, i32, i32) {
    %c0_i32 = arith.constant 0 : i32
    %c0_i32_0 = arith.constant 0 : i32
    %c0_i32_1 = arith.constant 0 : i32
    return %arg0, %c0_i32, %c0_i32_0 : i32, i32, i32
  }
  func.func @transform_2(%arg0: i32, %arg1: memref<2xi32, #tpu.memory_space<smem>>) -> (i32, i32, i32) {
    %c0_i32 = arith.constant 0 : i32
    %c0_i32_0 = arith.constant 0 : i32
    %c0_i32_1 = arith.constant 0 : i32
    return %arg0, %c0_i32, %c0_i32_0 : i32, i32, i32
  }
}

</mosaic_0001>

<bundles_post_ra>
// kernel: tpu_custom_call.1
= control target key start
LH: loop header
LB: loop body
LE: loop exit
PB: predicated region body
PF: predicated region fallthrough
CT: control target
= control target key end

     0   :  { %s337_s0 = inlined_call_operand.hbm [shape: s32[2], index: 0, kind: input, shape index: {}]   ;;  %s338_s1 = inlined_call_operand.hbm [shape: f32[8,2,32], index: 1, kind: input, shape index: {}]   ;;  %s339_s2 = inlined_call_operand.hbm [shape: f32[8,1,32], index: 2, kind: input, shape index: {}]   ;;  %s340_s3 = inlined_call_operand.hbm [shape: f32[8,2,32], index: 3, kind: output, shape index: {}]  }
   0x1   :  { %s160_s14 = scalar_lea.hbm %s337_s0, 16 }
   0x2   :  { %p161_p0 = scmp.ne.s32.totalorder %s337_s0, %s160_s14  ;;  %p164_p1 = scmp.lt.u32.totalorder %s160_s14, %s337_s0 }
   0x4   :  { %p166_p2 = pnand %p164_p1, %p161_p0 }
   0x6   :  { %169 = shalt.err (!%p166_p2)  }
   0x7   :  { %s244_s19 = smov [#allocation3]  }
   0x8   :  { %9 = dma.hbm_to_smem %s337_s0, 16, %s244_s19, [#allocation2] }
   0x9   :  { %236 = dma.done.wait [#allocation2], 16 }
   0xa   :  { %237 = vsyncadd [#allocation2], 4294967280 }
   0xb   :  { %11 = sfence }
   0xc   :  { %12 = vsyncpa [#allocation5], 0 }
   0xd   :  { %13 = vsyncpa [#allocation8], 0 }
   0xe   :  { %14 = vsyncpa [#allocation6], 0  ;;  %s245_s22 = smov [#allocation4]   ;;  %s170_s26 = scalar_lea.hbm %s338_s1, 256 }
   0xf   :  { %s20_s23 = sshll.u32 %s245_s22, 4  ;;  %p171_p3 = scmp.ne.s32.totalorder %s338_s1, %s170_s26  ;;  %s21_s23 = int_to_ptr.vmem [resolvable:$true] %s20_s23 }
  0x10   :  { %p174_p4 = scmp.lt.u32.totalorder %s170_s26, %s338_s1 }
  0x12   :  { %p176_p5 = pnand %p174_p4, %p171_p3 }
  0x14   :  { %179 = shalt.err (!%p176_p5)
}
  0x15   :  { %s180_s0 = scalar_lea.vmem %s21_s23, 256  ;;  %p185_p7 = scmp.lt.s32.totalorder %s21_s23, %s21_s23 }
  0x16   :  { %p181_p6 = scmp.ne.s32.totalorder %s21_s23, %s180_s0  ;;  %p186_p8 = scmp.lt.s32.totalorder %s180_s0, %s180_s0 }
  0x18   :  { %p187_p9 = por %p186_p8, %p185_p7 }
  0x1a   :  { %p188_p10 = pnand %p187_p9, %p181_p6 }
  0x1c   :  { %191 = shalt.err (!%p188_p10)
}
  0x1d   :  { %s246_s4 = smov 32   ;;  %s247_s5 = smov 2  }
  0x1e   :  { %26 = dma.hbm_to_vmem [thread:$0]  %s338_s1, 256, %s21_s23, [#allocation5], %s246_s4, %s246_s4, %s247_s5  }
  0x1f   :  { %s248_s8 = smov [#allocation7]   ;;  %s192_s12 = scalar_lea.hbm %s339_s2, 128 }
  0x20   :  { %s32_s9 = sshll.u32 %s248_s8, 4  ;;  %p193_p11 = scmp.ne.s32.totalorder %s339_s2, %s192_s12  ;;  %s33_s9 = int_to_ptr.vmem [resolvable:$true] %s32_s9 }
  0x21   :  { %p196_p12 = scmp.lt.u32.totalorder %s192_s12, %s339_s2 }
  0x23   :  { %p198_p13 = pnand %p196_p12, %p193_p11 }
  0x25   :  { %201 = shalt.err (!%p198_p13)
}
  0x26   :  { %s202_s17 = scalar_lea.vmem %s33_s9, 128  ;;  %p207_p1 = scmp.lt.s32.totalorder %s33_s9, %s33_s9 }
  0x27   :  { %p203_p0 = scmp.ne.s32.totalorder %s33_s9, %s202_s17  ;;  %p208_p2 = scmp.lt.s32.totalorder %s202_s17, %s202_s17 }
  0x29   :  { %p209_p3 = por %p208_p2, %p207_p1 }
  0x2b   :  { %p210_p4 = pnand %p209_p3, %p203_p0 }
  0x2d   :  { %213 = shalt.err (!%p210_p4)
}
  0x2e   :  { %s249_s1 = smov 16   ;;  %s250_s18 = smov 1  }
  0x2f   :  { %38 = dma.hbm_to_vmem [thread:$0]  %s339_s2, 128, %s33_s9, [#allocation8], %s249_s1, %s249_s1, %s250_s18  }
  0x30   :  { %238 = dma.done.wait [#allocation5], 256  }
  0x31   :  { %239 = vsyncadd [#allocation5], 4294967040 }
  0x32   :  { %240 = dma.done.wait [#allocation8], 128  }
  0x33   :  { %241 = vsyncadd [#allocation8], 4294967168  ;;  %vm117_vm0 = vcmask 254976   ;;  %s251_s21 = smov [#allocation9]   ;;  %v144_v0 = vld [vmem:[#allocation7] ss:$0 sm:$0xff] }
  0x34   :  { %s311_s22 = sshll.u32 %s251_s21, 4  ;;  %v53_v1 = vld [vmem:[#allocation4] sm:$0x3]  ;;  %v145_v2 = vld [vmem:[#allocation7 + $0x1] ss:$0 sm:$0xff]  ;;  %s132_s22 = int_to_ptr.vmem [resolvable:$true] %s311_s22 }
  0x35   :  { %v109_v3 = vadd.f32 %v144_v0, %v53_v1  ;;  %v54_v4 = vld [vmem:[#allocation4 + $0x2] sm:$0x3]  ;;  %v146_v5 = vld [vmem:[#allocation7 + $0x2] ss:$0 sm:$0xff]  ;;  %v55_v6 = vld [vmem:[#allocation4 + $0x4] sm:$0x3]  ;;  %p219_p6 = scmp.lt.s32.totalorder %s132_s22, %s132_s22 }
  0x36   :  { %v110_v7 = vadd.f32 %v145_v2, %v54_v4  ;;  %v111_v8 = vadd.f32 %v146_v5, %v55_v6  ;;  %v147_v9 = vld [vmem:[#allocation7 + $0x3] ss:$0 sm:$0xff]  ;;  %v56_v10 = vld [vmem:[#allocation4 + $0x6] sm:$0x3]  ;;  %v148_v11 = vld [vmem:[#allocation7 + $0x4] ss:$0 sm:$0xff] }
  0x37   :  { %118 = vst.msk [vmem:[#allocation9] sm:$0x3] %vm117_vm0, %v109_v3  ;;  %v112_v12 = vadd.f32 %v147_v9, %v56_v10  ;;  %v57_v13 = vld [vmem:[#allocation4 + $0x8] sm:$0x3]  ;;  %v149_v14 = vld [vmem:[#allocation7 + $0x5] ss:$0 sm:$0xff] }
  0x38   :  { %v58_v15 = vld [vmem:[#allocation4 + $0xa] sm:$0x3]  ;;  %119 = vst.msk [vmem:[#allocation9 + $0x2] sm:$0x3] %vm117_vm0, %v110_v7  ;;  %120 = vst.msk [vmem:[#allocation9 + $0x4] sm:$0x3] %vm117_vm0, %v111_v8  ;;  %v113_v16 = vadd.f32 %v148_v11, %v57_v13 }
  0x39   :  { %v114_v17 = vadd.f32 %v149_v14, %v58_v15  ;;  %v150_v18 = vld [vmem:[#allocation7 + $0x6] ss:$0 sm:$0xff]  ;;  %v59_v19 = vld [vmem:[#allocation4 + $0xc] sm:$0x3]  ;;  %v151_v20 = vld [vmem:[#allocation7 + $0x7] ss:$0 sm:$0xff] }
  0x3a   :  { %121 = vst.msk [vmem:[#allocation9 + $0x6] sm:$0x3] %vm117_vm0, %v112_v12  ;;  %v115_v21 = vadd.f32 %v150_v18, %v59_v19  ;;  %v60_v22 = vld [vmem:[#allocation4 + $0xe] sm:$0x3]  ;;  %122 = vst.msk [vmem:[#allocation9 + $0x8] sm:$0x3] %vm117_vm0, %v113_v16 }
  0x3b   :  { %123 = vst.msk [vmem:[#allocation9 + $0xa] sm:$0x3] %vm117_vm0, %v114_v17  ;;  %v116_v23 = vadd.f32 %v151_v20, %v60_v22  ;;  %s214_s2 = scalar_lea.vmem %s132_s22, 256 }
  0x3c   :  { %124 = vst.msk [vmem:[#allocation9 + $0xc] sm:$0x3] %vm117_vm0, %v115_v21  ;;  %p215_p5 = scmp.ne.s32.totalorder %s132_s22, %s214_s2  ;;  %p220_p7 = scmp.lt.s32.totalorder %s214_s2, %s214_s2 }
  0x3d   :  { %125 = vst.msk [vmem:[#allocation9 + $0xe] sm:$0x3] %vm117_vm0, %v116_v23 }
  0x3e   :  { %p221_p8 = por %p220_p7, %p219_p6 }
  0x40   :  { %p222_p9 = pnand %p221_p8, %p215_p5 }
  0x42   :  { %225 = shalt.err (!%p222_p9)
}
  0x43   :  { %s226_s25 = scalar_lea.hbm %s340_s3, 256 }
  0x44   :  { %p227_p10 = scmp.ne.s32.totalorder %s340_s3, %s226_s25  ;;  %p230_p11 = scmp.lt.u32.totalorder %s226_s25, %s340_s3 }
  0x46   :  { %p232_p12 = pnand %p230_p11, %p227_p10 }
  0x48   :  { %235 = shalt.err (!%p232_p12)
}
  0x49   :  { %137 = dma.vmem_to_hbm [thread:$0]  %s132_s22, 256, %s340_s3, [#allocation6], %s246_s4, %s246_s4, %s247_s5  }
  0x4a   :  { %242 = dma.done.wait [#allocation6], 256  }
  0x4b   :  { %243 = vsyncadd [#allocation6], 4294967040 }
  0x4c   :  { %141 = vsyncpa [#allocation5], 1 }
  0x4d   :  { %142 = vsyncpa [#allocation8], 1 }
  0x4e   :  { %143 = vsyncpa [#allocation6], 1 }

</bundles_post_ra>
